<compile_context>
chip_gen: v7x
topology: tpu7x:2x2x1
jax: 0.10.0
libtpu: 0.0.40
codegen_flags: <defaults>
</compile_context>

<pallas_src>
import jax
import jax.numpy as jnp
from jax import lax
from jax.experimental import pallas as pl
from jax.experimental.pallas import tpu as pltpu

K = 3  # ConvTranspose2d kernel size
S = 2  # ConvTranspose2d stride


def _round_up(a, b):
    return -(-a // b) * b


def _cdiv(a, b):
    return -(-a // b)


def _vmem_capacity_bytes():
    """Best-effort per-core VMEM capacity; conservative (v7x) fallback."""
    default = 64 * 1024 * 1024
    try:
        fn = getattr(pltpu, "get_tpu_info", None)
        if fn is None:
            return default
        info = fn()
        for attr in ("vmem_capacity_bytes", "vmem_bytes"):
            cap = getattr(info, attr, None)
            if cap:
                return int(cap)
    except Exception:
        pass
    return default


def _transition_up_kernel(x_ref, w_ref, b_ref, o_ref):
    # x_ref: (1, TR, 4*Cin)   bf16  shifted/stacked input rows for this tile
    # w_ref: (4*Cin, TC)      bf16  block-packed ConvTranspose2d weight tile
    # b_ref: (1, TC)          f32   bias tiled across parity planes (padded)
    # o_ref: (1, TR, TC)      bf16  lane-dense (128-multiple) output tile
    y = jnp.dot(x_ref[0], w_ref[...], preferred_element_type=jnp.float32)
    o_ref[0] = (y + b_ref[...]).astype(o_ref.dtype)   # single aligned store


def conv_transpose_pallas(x_nchw, weight, bias, crop_h, crop_w,
                          out_dtype=jnp.bfloat16):
    """ConvTranspose2d(k=3, s=2, bias=True) + center_crop to (crop_h, crop_w).

    Returns NHWC output of shape (N, crop_h, crop_w, Cout).
    weight: (Cin, Cout, 3, 3) PyTorch layout; bias: (Cout,).
    """
    N, Cin, H, W = x_nchw.shape
    Cout = weight.shape[1]
    Hp, Wp = H + 1, W + 1
    R = Hp * Wp

    # ---- lane-dense output packing: 4*Cout_pad is a multiple of 128 --------
    cout_pad = _round_up(Cout, 32)
    lane_out = 4 * cout_pad
    out_itemsize = jnp.dtype(out_dtype).itemsize

    # ---- optional Cout tiling (large channels): bound the weight slab ------
    TC = lane_out
    while TC > 128 and TC % 256 == 0 and (4 * Cin * TC * 2) * 2 > (8 << 20):
        TC //= 2
    n_ct = lane_out // TC
    w_block_bytes = 4 * Cin * TC * 2
    single_buffer_w = w_block_bytes > (4 << 20)   # v7x: don't double-buffer big weights

    # ---- generation-aware VMEM budget & row tiling --------------------------
    vmem_cap = _vmem_capacity_bytes()
    if vmem_cap >= 100 * 1024 * 1024:           # v5e / v6e (128 MiB VMEM)
        vmem_budget = 96 * 1024 * 1024
    else:                                       # v7x (64 MiB per core)
        vmem_budget = min(36 * 1024 * 1024, int(vmem_cap * 0.55))

    in_row_bytes = 4 * Cin * 2                  # bf16
    out_row_bytes = TC * out_itemsize
    w_bufs = 1 if single_buffer_w else 2
    fixed_bytes = w_bufs * w_block_bytes + 2 * TC * 4
    avail = max(vmem_budget - fixed_bytes - (2 << 20), 2 << 20)
    tr_cap = max(16, (avail // (2 * (in_row_bytes + out_row_bytes))) // 16 * 16)
    TR = max(16, min(_round_up(R, 16), tr_cap))   # multiple of 16 (bf16 sublanes)
    n_rt = _cdiv(R, TR)
    # guarantee >= 2 grid steps (v7x has 2 TensorCores sharded over parallel axes)
    if N * n_ct * n_rt < 2 and R > 16:
        TR = max(16, _round_up(_cdiv(R, 2), 16))
        n_rt = _cdiv(R, TR)
    R_pad = n_rt * TR

    # VMEM limit from the ACTUAL buffer counts (x/out double-buffered,
    # weight w_bufs-buffered, bias double-buffered) + margin.
    need = (2 * TR * in_row_bytes + 2 * TR * out_row_bytes
            + w_bufs * w_block_bytes + 2 * TC * 4)
    vmem_limit = int(max(8 << 20, min(need + (2 << 20), vmem_budget)))
    vmem_limit = int(max(vmem_limit, need + (1 << 20)))

    # ---- pack input: 4 shifted zero-padded copies stacked on the lane dim ---
    # bf16 FIRST so every packing pass moves half the bytes.
    # x_big[n, m*Wp + q, g*Cin + ci] = x[n, ci, m - g//2, q - g%2]   (0 if OOB)
    x_nhwc = jnp.transpose(x_nchw, (0, 2, 3, 1)).astype(jnp.bfloat16)
    shifted = [
        jnp.pad(x_nhwc, ((0, 0), (g // 2, 1 - g // 2), (g % 2, 1 - g % 2), (0, 0)))
        for g in range(4)
    ]
    x_big = jnp.concatenate(shifted, axis=-1).reshape(N, R, 4 * Cin)
    x_big = jnp.pad(x_big, ((0, 0), (0, R_pad - R), (0, 0)))

    # ---- pack weights: block (shift-group g, parity plane p) = tap (kh,kw) --
    # plane p = (kh%2)*2 + (kw%2) ; shift group g = (kh//2)*2 + (kw//2)
    w_big = jnp.zeros((4 * Cin, lane_out), jnp.float32)
    for g in range(4):
        rg, cg = g // 2, g % 2
        for p in range(4):
            pr, pc = p // 2, p % 2
            kh, kw = 2 * rg + pr, 2 * cg + pc
            if kh < K and kw < K:
                w_big = w_big.at[g * Cin:(g + 1) * Cin,
                                 p * cout_pad:p * cout_pad + Cout].set(
                    weight[:, :, kh, kw].astype(jnp.float32))
    w_big = w_big.astype(jnp.bfloat16)

    bias_pad = jnp.pad(bias.astype(jnp.float32), (0, cout_pad - Cout))
    bias_big = jnp.tile(bias_pad, 4).reshape(1, lane_out)

    cost = pl.CostEstimate(
        flops=2 * N * R_pad * (4 * Cin) * lane_out,
        transcendentals=0,
        bytes_accessed=int(x_big.size * 2 + w_big.size * 2
                           + bias_big.size * 4 + N * R_pad * lane_out * out_itemsize),
    )

    x_spec = pl.BlockSpec((1, TR, 4 * Cin), lambda n, c, r: (n, r, 0))
    if single_buffer_w:
        # Weight block index is constant along the (innermost) row axis: it is
        # resident, so single-buffer it to halve its VMEM footprint (v7x).
        w_spec = pl.BlockSpec((4 * Cin, TC), lambda n, c, r: (0, c),
                              pipeline_mode=pl.Buffered(1))
    else:
        w_spec = pl.BlockSpec((4 * Cin, TC), lambda n, c, r: (0, c))
    b_spec = pl.BlockSpec((1, TC), lambda n, c, r: (0, c))
    o_spec = pl.BlockSpec((1, TR, TC), lambda n, c, r: (n, r, c))

    out_flat = pl.pallas_call(
        _transition_up_kernel,
        out_shape=jax.ShapeDtypeStruct((N, R_pad, lane_out), out_dtype),
        grid_spec=pltpu.PrefetchScalarGridSpec(
            num_scalar_prefetch=0,
            grid=(N, n_ct, n_rt),        # row axis innermost -> weight resident
            in_specs=[x_spec, w_spec, b_spec],
            out_specs=o_spec,
        ),
        compiler_params=pltpu.CompilerParams(
            dimension_semantics=("parallel", "parallel", "parallel"),
            vmem_limit_bytes=vmem_limit),
        cost_estimate=cost,
    )(x_big, w_big, bias_big)

    # ---- crop in parity space, then de-interleave parity planes -------------
    # True transposed-conv extent is (2H+1, 2W+1); crop offsets as in PyTorch
    # center_crop (floor division of the nonnegative difference).
    oh, ow = 2 * H + 1, 2 * W + 1
    r0 = (oh - crop_h) // 2
    c0 = (ow - crop_w) // 2
    # TODO(synk): skip larger than the conv-transpose extent (negative offset)
    # is not supported, matching only the nonnegative-crop PyTorch usage.
    m0, q0 = r0 // 2, c0 // 2
    m1 = (r0 + crop_h + 1) // 2
    q1 = (c0 + crop_w + 1) // 2

    out = out_flat[:, :R, :].reshape(N, Hp, Wp, 2, 2, cout_pad)
    # coarse parity-space crop + drop the Cout lane padding (fused by XLA
    # into the relayout below -> it only touches ~the skip-sized window).
    out = out[:, m0:m1, q0:q1, :, :, :Cout]
    out = out.transpose(0, 1, 3, 2, 4, 5).reshape(
        N, 2 * (m1 - m0), 2 * (q1 - q0), Cout)
    out = out[:, r0 - 2 * m0: r0 - 2 * m0 + crop_h,
              c0 - 2 * q0: c0 - 2 * q0 + crop_w, :]
    return out


def transition_up(x_nchw, skip_nchw, weight, bias):
    """PyTorch-equivalent _TransitionUp.forward(x, skip) (NCHW in / NCHW out).

    weight: (Cin, Cout, 3, 3)  -- PyTorch ConvTranspose2d weight layout
    bias:   (Cout,)
    """
    sh, sw = skip_nchw.shape[2], skip_nchw.shape[3]
    out_nhwc = conv_transpose_pallas(x_nchw, weight, bias, sh, sw)

    res_dtype = jnp.promote_types(x_nchw.dtype, skip_nchw.dtype)
    # single transpose back to NCHW; skip is never transposed.
    out_nchw = jnp.transpose(out_nhwc, (0, 3, 1, 2)).astype(res_dtype)
    cat = jnp.concatenate([out_nchw, skip_nchw.astype(res_dtype)], axis=1)
    return cat


def transition_up_reference(x, skip, weight, bias):
    """Pure-JAX reference (lax conv) for validation."""
    w_flip = weight[:, :, ::-1, ::-1]                      # flip spatial taps
    out = lax.conv_general_dilated(
        x.astype(jnp.float32), w_flip.astype(jnp.float32),
        window_strides=(1, 1),
        padding=((K - 1, K - 1), (K - 1, K - 1)),
        lhs_dilation=(S, S),
        rhs_dilation=(1, 1),
        dimension_numbers=('NCHW', 'IOHW', 'NCHW'),
        precision=lax.Precision.HIGHEST)
    out = out + bias[None, :, None, None]
    sh, sw = skip.shape[2], skip.shape[3]
    y2 = (out.shape[2] - sh) // 2
    x1 = (out.shape[3] - sw) // 2
    out = out[:, :, y2:y2 + sh, x1:x1 + sw]
    return jnp.concatenate([out, skip.astype(jnp.float32)], axis=1)


if __name__ == "__main__":
    key = jax.random.PRNGKey(0)
    k1, k2, k3, k4 = jax.random.split(key, 4)

    N, CIN, H, W = 2, 4, 8, 8          # x:    (2, 4, 8, 8)
    COUT = 8                           # num_output_features
    CSKIP, SH, SW = 6, 2 * H, 2 * W    # skip: (2, 6, 16, 16)

    x = jax.random.normal(k1, (N, CIN, H, W), dtype=jnp.float32)
    skip = jax.random.normal(k2, (N, CSKIP, SH, SW), dtype=jnp.float32)
    weight = 0.1 * jax.random.normal(k3, (CIN, COUT, K, K), dtype=jnp.float32)
    bias = 0.1 * jax.random.normal(k4, (COUT,), dtype=jnp.float32)

    out = jax.jit(transition_up)(x, skip, weight, bias)
    out = jax.block_until_ready(out)

    ref = jax.block_until_ready(transition_up_reference(x, skip, weight, bias))

    assert out.shape == (N, COUT + CSKIP, SH, SW), out.shape
    # bf16 inputs / weights / kernel output (f32 accumulate) -> loose tolerance.
    max_err = float(jnp.max(jnp.abs(out.astype(jnp.float32) - ref)))
    assert max_err < 5e-2, f"max abs error too large: {max_err}"

    print("KERNEL_OK")
</pallas_src>

<mosaic_0001>
module attributes {stable_mosaic.version = 11 : i64} {
  func.func @_transition_up_kernel(%arg0: i32, %arg1: i32, %arg2: i32, %arg3: memref<1x96x16xbf16, #tpu.memory_space<vmem>>, %arg4: memref<16x128xbf16, #tpu.memory_space<vmem>>, %arg5: memref<1x128xf32, #tpu.memory_space<vmem>>, %arg6: memref<1x96x128xbf16, #tpu.memory_space<vmem>>) attributes {dimension_semantics = [#tpu.dimension_semantics<parallel>, #tpu.dimension_semantics<parallel>, #tpu.dimension_semantics<parallel>], iteration_bounds = array<i64: 2, 1, 1>, scalar_prefetch = 0 : i64, scratch_operands = 0 : i64, tpu.core_type = #tpu.core_type<tc>, window_params = [{transform_indices = @transform_0, window_bounds = array<i64: 1, 96, 16>}, {transform_indices = @transform_1, window_bounds = array<i64: 16, 128>}, {transform_indices = @transform_2, window_bounds = array<i64: 1, 128>}, {transform_indices = @transform_3, window_bounds = array<i64: 1, 96, 128>}]} {
    %c0 = arith.constant 0 : index
    %c0_0 = arith.constant 0 : index
    %c0_1 = arith.constant 0 : index
    %0 = vector.load %arg3[%c0, %c0_0, %c0_1] : memref<1x96x16xbf16, #tpu.memory_space<vmem>>, vector<1x96x16xbf16>
    %1 = vector.shape_cast %0 : vector<1x96x16xbf16> to vector<96x16xbf16>
    %c0_2 = arith.constant 0 : index
    %c0_3 = arith.constant 0 : index
    %2 = vector.load %arg4[%c0_2, %c0_3] : memref<16x128xbf16, #tpu.memory_space<vmem>>, vector<16x128xbf16>
    %cst = arith.constant dense<0.000000e+00> : vector<96x128xf32>
    %3 = tpu.matmul %1, %2, %cst {dimension_numbers = #tpu.dot_dimension_numbers<[1], [0], [0], [1], [0, 0, 1, 1], [], []>} : vector<96x16xbf16>, vector<16x128xbf16>, vector<96x128xf32> -> vector<96x128xf32>
    %c0_4 = arith.constant 0 : index
    %c0_5 = arith.constant 0 : index
    %4 = vector.load %arg5[%c0_4, %c0_5] : memref<1x128xf32, #tpu.memory_space<vmem>>, vector<1x128xf32>
    %5 = vector.broadcast %4 : vector<1x128xf32> to vector<96x128xf32>
    %6 = arith.addf %3, %5 : vector<96x128xf32>
    %7 = arith.truncf %6 : vector<96x128xf32> to vector<96x128xbf16>
    %c0_6 = arith.constant 0 : index
    %c0_7 = arith.constant 0 : index
    %c0_8 = arith.constant 0 : index
    %8 = vector.load %arg6[%c0_6, %c0_7, %c0_8] : memref<1x96x128xbf16, #tpu.memory_space<vmem>>, vector<1x96x128xbf16>
    %9 = vector.shape_cast %8 : vector<1x96x128xbf16> to vector<96x128xbf16>
    %10 = vector.shape_cast %7 : vector<96x128xbf16> to vector<1x96x128xbf16>
    tpu.vector_store %arg6[%c0_6, %c0_7, %c0_8], %10 {strides = array<i32>} : memref<1x96x128xbf16, #tpu.memory_space<vmem>>, vector<1x96x128xbf16>,
    return
  }
  func.func @transform_0(%arg0: i32, %arg1: i32, %arg2: i32) -> (i32, i32, i32) {
    %c0_i32 = arith.constant 0 : i32
    %c0_i32_0 = arith.constant 0 : i32
    return %arg0, %arg2, %c0_i32 : i32, i32, i32
  }
  func.func @transform_1(%arg0: i32, %arg1: i32, %arg2: i32) -> (i32, i32) {
    %c0_i32 = arith.constant 0 : i32
    %c0_i32_0 = arith.constant 0 : i32
    return %c0_i32, %arg1 : i32, i32
  }
  func.func @transform_2(%arg0: i32, %arg1: i32, %arg2: i32) -> (i32, i32) {
    %c0_i32 = arith.constant 0 : i32
    %c0_i32_0 = arith.constant 0 : i32
    return %c0_i32, %arg1 : i32, i32
  }
  func.func @transform_3(%arg0: i32, %arg1: i32, %arg2: i32) -> (i32, i32, i32) {
    %c0_i32 = arith.constant 0 : i32
    return %arg0, %arg2, %arg1 : i32, i32, i32
  }
}

</mosaic_0001>

<bundles_post_ra>
// kernel: tile.8
= control target key start
LH: loop header
LB: loop body
LE: loop exit
PB: predicated region body
PF: predicated region fallthrough
CT: control target
= control target key end

     0   :  { %s22_s0 = inlined_call_operand.vmem [shape: f32[32], index: 0, kind: input, shape index: {}]   ;;  %s23_s1 = inlined_call_operand.vmem [shape: f32[4,32], index: 1, kind: output, shape index: {}]  }
   0x1   :  { %v4_v0 = vld [vmem:[%s22_s0] ss:$0 sm:$0xff] }
   0x2   :  { %5 = vst [vmem:[%s23_s1] sm:$0xf] %v4_v0 }

// kernel: tile.9
= control target key start
LH: loop header
LB: loop body
LE: loop exit
PB: predicated region body
PF: predicated region fallthrough
CT: control target
= control target key end

     0   :  { %vm7_vm0 = vcmask 261120   ;;  %s37_s8 = smov 32   ;;  %s38_s9 = smov 64   ;;  %vm13_vm1 = vcmask 1048320   ;;  %vm19_vm2 = vcmask 785920   ;;  %vm25_vm3 = vcmask 523520   ;;  %s55_s0 = inlined_call_operand.vmem [shape: f32[4,32], index: 0, kind: input, shape index: {}]   ;;  %s56_s1 = inlined_call_operand.vmem [shape: f32[1,128], index: 1, kind: output, shape index: {}]  }
   0x1   :  { %v4_v0 = vld [vmem:[%s55_s0] sm:$0xf]  ;;  %s36_s0 = smov 96  }
   0x2   :  { %5 = vst [vmem:[#allocation1] sm:$0xf] %v4_v0 }
   0x9   :  { %v10_v1 = vld [vmem:[#allocation1 + $0x3] sm:$0x1]   ;;  %v22_v2 = vld [vmem:[#allocation1 + $0x1] sm:$0x1]   ;;  %v6_v3 = vld [vmem:[#allocation1] sm:$0x1]  }
   0xa   :  { %11 = vrot.lane.b32.xlu0 %v10_v1, %s36_s0  ;;  %23 = vrot.lane.b32.xlu1 %v22_v2, %s37_s8  ;;  %v16_v4 = vld [vmem:[#allocation1 + $0x2] sm:$0x1]   ;;  %8 = vst.msk [vmem:[#allocation0] sm:$0x1] %vm7_vm0, %v6_v3  }
   0xe   :  { %17 = vrot.lane.b32.xlu0 %v16_v4, %s38_s9 }
  0x7c   :  { %v12_v5 = vpop.permute.xlu0 %11   ;;  %v24_v6 = vpop.permute.xlu1 %23  }
  0x7d   :  { %14 = vst.msk [vmem:[#allocation0] sm:$0x1] %vm13_vm1, %v12_v5  }
  0x80   :  { %v18_v7 = vpop.permute.xlu0 %17  }
  0x81   :  { %20 = vst.msk [vmem:[#allocation0] sm:$0x1] %vm19_vm2, %v18_v7  }
  0x82   :  { %26 = vst.msk [vmem:[#allocation0] sm:$0x1] %vm25_vm3, %v24_v6  }
  0x89   :  { %v30_v8 = vld [vmem:[#allocation0] sm:$0x1] }
  0x8a   :  { %32 = vst [vmem:[%s56_s1] sm:$0x1] %v30_v8 }

// kernel: transition_up.1
= control target key start
LH: loop header
LB: loop body
LE: loop exit
PB: predicated region body
PF: predicated region fallthrough
CT: control target
= control target key end

     0   :  { %s784_s12 = smov 0   ;;  %s786_s13 = smov 0   ;;  %s826_s0 = inlined_call_operand.vmem [shape: bf16[2,96,16], index: 0, kind: input, shape index: {}]   ;;  %s827_s1 = inlined_call_operand.vmem [shape: bf16[16,128], index: 1, kind: input, shape index: {}]   ;;  %s828_s2 = inlined_call_operand.vmem [shape: f32[1,128], index: 2, kind: input, shape index: {}]   ;;  %s829_s3 = inlined_call_operand.vmem [shape: bf16[2,96,128], index: 3, kind: output, shape index: {}]  }
   0x1   :  { %s788_s14 = smov 0  }
   0x2 LB: > { %s32_s15 = sadd.s32 1, %s758_s13  ;;  %p607_p0 = scmp.ge.s32.totalorder %s762_s14, 1  ;;  %s762_s14 = sphi %s788_s14, %s13_s14   ;;  %s758_s13 = sphi %s786_s13, %s831_s13   ;;  %s754_s12 = sphi %s784_s12, %s830_s12  }
   0x3   : > { %p34_p1 = scmp.ge.s32.totalorder %s32_s15, 2  ;;  %p184_p2 = scmp.lt.s32.totalorder %s762_s14, 3 }
   0x5   : > { %s833_s15 = smov (%p34_p1, %s32_s15), 0  ;;  %p185_p3 = pnand %p607_p0, %p184_p2 }
   0x6   : > { %v733_v0 = vld [vmem:[%s827_s1] sm:$0xff] (!%p185_p3)   ;;  %p227_p4 = scmp.lt.s32.totalorder (!%p185_p3), %s754_s12, 1  ;;  %vm314_vm0 = vcmask (!%p185_p3), 130048  }
   0x7   : > { %188 = sbr.rel (%p185_p3) target bundleno = 248 (0xf8), region = 32  ;;  %706 = vmatprep.subr.bf16.mxu1 (!%p185_p3), %v733_v0  ;;  %692 = vmatprep.subr.bf16.mxu0 (!%p185_p3), %v733_v0  ;;  %v610_v7 = vld [vmem:[%s828_s2] ss:$0 sm:$0xff] (!%p185_p3) }
   0x8   : > { %707 = vmatpush3.bf16.msra.mxu1 (!%p185_p3), %v733_v0  ;;  %693 = vmatpush3.bf16.msra.mxu0 (!%p185_p3), %v733_v0 }
   0xe   : > { %s835_s12 = smov (!%p227_p4, %s754_s12), 1 }
   0xf   : > { %s708_s18 = smul.u32 48, %s835_s12 }
  0x11   : > { %s234_s21 = scalar_lea.vmem %s826_s0, %s708_s18  ;;  %s254_s26 = scalar_lea.vmem %s829_s3, %s708_s18 }
  0x12   : > { %v734_v1 = vld [vmem:[%s234_s21 + $0x10] sm:$0xff]   ;;  %v735_v2 = vld [vmem:[%s234_s21 + $0x18] sm:$0xff]   ;;  %v736_v3 = vld [vmem:[%s234_s21] sm:$0xff]  }
  0x13   : > { %698 = vmatprep.mubr.msk.bf16.mxu1 %vm314_vm0, %v734_v1  ;;  %v737_v4 = vld [vmem:[%s234_s21 + $0x8] sm:$0xff]   ;;  %694 = vmatprep.mubr.msk.bf16.mxu0 %vm314_vm0, %v736_v3  ;;  %v738_v5 = vld [vmem:[%s234_s21 + $0x20] sm:$0xff]  }
  0x14   : > { %699 = vmatmul.mubr.msk.bf16.vlgmr.msra.gmra.mrb[0].mxu1 %vm314_vm0, %v735_v2  ;;  %695 = vmatmul.mubr.msk.bf16.vlgmr.msra.gmra.mrb[0].mxu0 %vm314_vm0, %v737_v4  ;;  %v739_v6 = vld [vmem:[%s234_s21 + $0x28] sm:$0xff]  }
  0x15   : > { %702 = vmatprep.mubr.msk.bf16.mxu1 %vm314_vm0, %v738_v5 }
  0x1c   : > { %703 = vmatmul.mubr.msk.bf16.gmra.mrb[4].mxu1 %vm314_vm0, %v739_v6 }
  0xe7   : > { %v700_v8 = vpop.f32.mrb[0].mxu1  ;;  %v696_v11 = vpop.f32.mrb[0].mxu0 }
  0xe8   : > { %v383_v9 = vpop.f32.mrb[1].mxu1  ;;  %v392_v12 = vadd.f32 %v700_v8, %v610_v7  ;;  %v376_v15 = vadd.f32 %v696_v11, %v610_v7  ;;  %v367_v16 = vpop.f32.mrb[1].mxu0 }
  0xe9   : > { %v701_v10 = vpop.f32.mrb[2].mxu1  ;;  %v384_v17 = vadd.f32 %v610_v7, %v383_v9  ;;  %v368_v19 = vadd.f32 %v610_v7, %v367_v16  ;;  %v697_v20 = vpop.f32.mrb[2].mxu0 }
  0xea   : > { %v395_v13 = vadd.f32 %v701_v10, %v610_v7  ;;  %v386_v14 = vpop.f32.mrb[3].mxu1  ;;  %v379_v22 = vadd.f32 %v697_v20, %v610_v7  ;;  %v370_v23 = vpop.f32.mrb[3].mxu0 }
  0xeb   : > { %v387_v18 = vadd.f32 %v610_v7, %v386_v14  ;;  %v371_v25 = vadd.f32 %v610_v7, %v370_v23 }
  0xec   : > { %v668_v21 = vpack.c.bf16 %v395_v13, %v392_v12  ;;  %v658_v26 = vpack.c.bf16 %v379_v22, %v376_v15 }
  0xed   : > { %v663_v24 = vpack.c.bf16 %v387_v18, %v384_v17  ;;  %v653_v27 = vpack.c.bf16 %v371_v25, %v368_v19 }
  0xee   : > { %682 = vst [vmem:[%s254_s26 + $0x18] sm:$0xff] %v668_v21   ;;  %680 = vst [vmem:[%s254_s26 + $0x8] sm:$0xff] %v658_v26  }
  0xef   : > { %681 = vst [vmem:[%s254_s26 + $0x10] sm:$0xff] %v663_v24   ;;  %v704_v28 = vpop.f32.mrb[4].mxu1  ;;  %654 = vst [vmem:[%s254_s26] sm:$0xff] %v653_v27  }
  0xf0   : > { %v399_v29 = vpop.f32.mrb[5].mxu1  ;;  %v408_v31 = vadd.f32 %v704_v28, %v610_v7 }
  0xf1   : > { %v705_v30 = vpop.f32.mrb[6].mxu1  ;;  %v400_v34 = vadd.f32 %v610_v7, %v399_v29 }
  0xf2   : > { %v411_v32 = vadd.f32 %v705_v30, %v610_v7  ;;  %v402_v33 = vpop.f32.mrb[7].mxu1 }
  0xf3   : > { %v403_v35 = vadd.f32 %v610_v7, %v402_v33 }
  0xf4   : > { %v678_v36 = vpack.c.bf16 %v411_v32, %v408_v31 }
  0xf5   : > { %v673_v37 = vpack.c.bf16 %v403_v35, %v400_v34 }
  0xf6   : > { %684 = vst [vmem:[%s254_s26 + $0x28] sm:$0xff] %v678_v36  }
  0xf7   : > { %683 = vst [vmem:[%s254_s26 + $0x20] sm:$0xff] %v673_v37  }
  0xf8 PF: > { %s13_s14 = sadd.s32 1, %s762_s14   ;;  %s830_s12 = smov %s758_s13 }
  0xf9   : > { %p10_p5 = scmp.ge.s32.totalorder %s13_s14, 4   ;;  %s831_s13 = smov %s833_s15 }
  0xfb   :  { %12 = sbr.rel (!%p10_p5) target bundleno = 2 (0x2), region = 68 }

</bundles_post_ra>
